<compile_context>
chip_gen: v6e
topology: v6e:2x2x1
jax: 0.10.0
libtpu: 0.0.40
codegen_flags: <defaults>
</compile_context>

<pallas_src>
import functools

import jax
import jax.numpy as jnp
from jax.experimental import pallas as pl
from jax.experimental.pallas import tpu as pltpu

P_DROP = 0.5       # DropoutLayer(p=0.5)
THRESHOLD = 0.9    # kept for fidelity with the module; unused in forward

_LANE_WIDTH = 512          # wide, lane-dense last dim (multiple of 128)
_MAX_BLOCK_ROWS = 512      # up to (512, 512) f32 = 1 MiB per block
_SUBLANE = 8

_ON_TPU = jax.default_backend() == "tpu"


def _dropout_core(x, bits_u32, *, p):
    """Shared elementwise body: integer-domain keep threshold, native dtype."""
    thr = jnp.uint32(min(int(round(p * 2.0 ** 32)), 2 ** 32 - 1))
    scale = jnp.asarray(1.0 / (1.0 - p), dtype=x.dtype)
    keep = bits_u32 >= thr            # P(keep) = 1 - p
    return jnp.where(keep, x * scale, jnp.zeros_like(x))


def _dropout_kernel_tpu(seed_ref, x_ref, o_ref, *, p):
    # In-kernel hardware PRNG: no extra HBM read for random bits.
    # Decorrelate grid steps by passing program_id as a second seed word.
    pltpu.prng_seed(seed_ref[0], pl.program_id(0))
    bits = pltpu.bitcast(pltpu.prng_random_bits(x_ref.shape), jnp.uint32)
    o_ref[...] = _dropout_core(x_ref[...], bits, p=p).astype(o_ref.dtype)


def _dropout_kernel_bits(x_ref, bits_ref, o_ref, *, p):
    # Portable fallback (also used by the CPU interpreter): bits come in as an
    # ordinary pipelined input.
    o_ref[...] = _dropout_core(x_ref[...], bits_ref[...], p=p).astype(o_ref.dtype)


def dropout_forward(x, seed, p=P_DROP, training=True):
    """Inverted dropout on an arbitrary-shaped array (e.g. NCHW)."""
    if (not training) or p <= 0.0:
        return x
    if p >= 1.0:
        return jnp.zeros_like(x)

    orig_shape = x.shape
    flat = x.reshape(-1)
    n = flat.shape[0]

    lane = _LANE_WIDTH
    align = _SUBLANE * lane
    pad = (-n) % align
    if pad:  # only pay the extra HBM pass when the size is actually unaligned
        flat = jnp.pad(flat, (0, pad))
    m = flat.shape[0] // lane          # multiple of 8
    x2 = flat.reshape(m, lane)

    tm = min(_MAX_BLOCK_ROWS, m)       # both multiples of 8
    grid = (pl.cdiv(m, tm),)
    cparams = pltpu.CompilerParams(dimension_semantics=("parallel",))
    out_shape = jax.ShapeDtypeStruct((m, lane), x2.dtype)

    if _ON_TPU:
        seed_arr = jnp.asarray([seed], dtype=jnp.int32)
        out2 = pl.pallas_call(
            functools.partial(_dropout_kernel_tpu, p=float(p)),
            out_shape=out_shape,
            grid_spec=pltpu.PrefetchScalarGridSpec(
                num_scalar_prefetch=1,
                grid=grid,
                in_specs=[pl.BlockSpec((tm, lane), lambda i, seed: (i, 0))],
                out_specs=pl.BlockSpec((tm, lane), lambda i, seed: (i, 0)),
            ),
            compiler_params=cparams,
        )(seed_arr, x2)
    else:
        bits = jax.random.bits(jax.random.PRNGKey(seed), (m, lane),
                               dtype=jnp.uint32)
        out2 = pl.pallas_call(
            functools.partial(_dropout_kernel_bits, p=float(p)),
            out_shape=out_shape,
            grid=grid,
            in_specs=[pl.BlockSpec((tm, lane), lambda i: (i, 0)),
                      pl.BlockSpec((tm, lane), lambda i: (i, 0))],
            out_specs=pl.BlockSpec((tm, lane), lambda i: (i, 0)),
            compiler_params=cparams,
        )(x2, bits)

    out_flat = out2.reshape(-1)
    if pad:
        out_flat = out_flat[:n]
    return out_flat.reshape(orig_shape)


if __name__ == "__main__":
    key = jax.random.PRNGKey(0)
    # small NCHW input consistent with a conv-net feature map
    x = jax.random.normal(key, (2, 4, 16, 16), dtype=jnp.float32)

    y = dropout_forward(x, seed=0, p=P_DROP, training=True)
    y = jax.block_until_ready(y)

    # sanity checks: shape/dtype preserved; surviving elements equal x / (1 - p)
    assert y.shape == x.shape and y.dtype == x.dtype
    kept = y != 0.0
    scale = 1.0 / (1.0 - P_DROP)
    assert bool(jnp.all(jnp.abs(jnp.where(kept, y - x * scale, 0.0)) < 1e-5))
    # keep-fraction should be roughly 1 - p (very loose bounds, 2048 samples)
    frac = float(jnp.mean(kept.astype(jnp.float32)))
    assert 0.25 < frac < 0.75

    # eval mode is identity
    y_eval = jax.block_until_ready(dropout_forward(x, seed=0, p=P_DROP,
                                                   training=False))
    assert bool(jnp.all(y_eval == x))

    print("KERNEL_OK")
</pallas_src>

<mosaic_0001>
module attributes {stable_mosaic.version = 11 : i64} {
  func.func @_dropout_kernel_bits(%arg0: i32, %arg1: memref<8x512xf32, #tpu.memory_space<vmem>>, %arg2: memref<8x512xi32, #tpu.memory_space<vmem>>, %arg3: memref<8x512xf32, #tpu.memory_space<vmem>>) attributes {dimension_semantics = [#tpu.dimension_semantics<parallel>], iteration_bounds = array<i64: 1>, scalar_prefetch = 0 : i64, scratch_operands = 0 : i64, tpu.core_type = #tpu.core_type<tc>, window_params = [{transform_indices = @transform_0, window_bounds = array<i64: 8, 512>}, {transform_indices = @transform_1, window_bounds = array<i64: 8, 512>}, {transform_indices = @transform_2, window_bounds = array<i64: 8, 512>}]} {
    %c0 = arith.constant 0 : index
    %c0_0 = arith.constant 0 : index
    %0 = vector.load %arg1[%c0, %c0_0] : memref<8x512xf32, #tpu.memory_space<vmem>>, vector<8x512xf32>
    %c0_1 = arith.constant 0 : index
    %c0_2 = arith.constant 0 : index
    %1 = vector.load %arg2[%c0_1, %c0_2] : memref<8x512xi32, #tpu.memory_space<vmem>>, vector<8x512xi32>
    %c-2147483648_i32 = arith.constant -2147483648 : i32
    %2 = vector.broadcast %c-2147483648_i32 : i32 to vector<8x512xi32>
    %3 = arith.cmpi uge, %1, %2 : vector<8x512xi32>
    %cst = arith.constant 2.000000e+00 : f32
    %4 = vector.broadcast %cst : f32 to vector<8x512xf32>
    %5 = arith.mulf %0, %4 : vector<8x512xf32>
    %cst_3 = arith.constant 0.000000e+00 : f32
    %6 = vector.broadcast %cst_3 : f32 to vector<8x512xf32>
    %7 = arith.select %3, %5, %6 : vector<8x512xi1>, vector<8x512xf32>
    %c0_4 = arith.constant 0 : index
    %c0_5 = arith.constant 0 : index
    %8 = vector.load %arg3[%c0_4, %c0_5] : memref<8x512xf32, #tpu.memory_space<vmem>>, vector<8x512xf32>
    tpu.vector_store %arg3[%c0_4, %c0_5], %7 {strides = array<i32>} : memref<8x512xf32, #tpu.memory_space<vmem>>, vector<8x512xf32>,
    return
  }
  func.func @transform_0(%arg0: i32) -> (i32, i32) {
    %c0_i32 = arith.constant 0 : i32
    %c0_i32_0 = arith.constant 0 : i32
    return %arg0, %c0_i32 : i32, i32
  }
  func.func @transform_1(%arg0: i32) -> (i32, i32) {
    %c0_i32 = arith.constant 0 : i32
    %c0_i32_0 = arith.constant 0 : i32
    return %arg0, %c0_i32 : i32, i32
  }
  func.func @transform_2(%arg0: i32) -> (i32, i32) {
    %c0_i32 = arith.constant 0 : i32
    %c0_i32_0 = arith.constant 0 : i32
    return %arg0, %c0_i32 : i32, i32
  }
}

</mosaic_0001>

<bundles_post_ra>
// kernel: tpu_custom_call.1
= control target key start
LH: loop header
LB: loop body
LE: loop exit
PB: predicated region body
PF: predicated region fallthrough
CT: control target
= control target key end

     0   :  { %7 = vsyncpa [#allocation3], 0  ;;  %s172_s0 = inlined_call_operand.hbm [shape: f32[8,512], index: 0, kind: input, shape index: {}]   ;;  %s173_s1 = inlined_call_operand.hbm [shape: u32[8,512], index: 1, kind: input, shape index: {}]   ;;  %s174_s2 = inlined_call_operand.hbm [shape: f32[8,512], index: 2, kind: output, shape index: {}]  }
   0x1   :  { %8 = vsyncpa [#allocation6], 0 }
   0x2   :  { %9 = vsyncpa [#allocation4], 0  ;;  %s145_s9 = smov [#allocation2]   ;;  %s146_s11 = smov [#allocation5]  }
   0x3   :  { %s16_s10 = sshll.u32 %s145_s9, 4  ;;  %s26_s12 = sshll.u32 %s146_s11, 4  ;;  %s17_s10 = int_to_ptr.vmem [resolvable:$true] %s16_s10  ;;  %s27_s12 = int_to_ptr.vmem [resolvable:$true] %s26_s12 }
   0x4   :  { %s87_s13 = scalar_lea.vmem %s17_s10, 512  ;;  %p92_p1 = scmp.lt.s32.totalorder %s17_s10, %s17_s10 }
   0x5   :  { %p88_p0 = scmp.ne.s32.totalorder %s17_s10, %s87_s13  ;;  %p93_p2 = scmp.lt.s32.totalorder %s87_s13, %s87_s13 }
   0x7   :  { %p94_p3 = por %p93_p2, %p92_p1 }
   0x9   :  { %p95_p4 = pnand %p94_p3, %p88_p0 }
   0xb   :  { %98 = shalt.err (!%p95_p4)
}
   0xc   :  { %19 = dma.hbm_to_vmem [thread:$0]  %s172_s0, 512, %s17_s10, [#allocation3]  }
   0xd   :  { %s107_s16 = scalar_lea.vmem %s27_s12, 512  ;;  %p112_p6 = scmp.lt.s32.totalorder %s27_s12, %s27_s12 }
   0xe   :  { %p108_p5 = scmp.ne.s32.totalorder %s27_s12, %s107_s16  ;;  %p113_p7 = scmp.lt.s32.totalorder %s107_s16, %s107_s16 }
  0x10   :  { %p114_p8 = por %p113_p7, %p112_p6 }
  0x12   :  { %p115_p9 = pnand %p114_p8, %p108_p5 }
  0x14   :  { %118 = shalt.err (!%p115_p9)
}
  0x15   :  { %29 = dma.hbm_to_vmem [thread:$0]  %s173_s1, 512, %s27_s12, [#allocation6]  }
  0x16   :  { %139 = dma.done.wait [#allocation3], 512  }
  0x17   :  { %140 = vsyncadd [#allocation3], 4294966784 }
  0x18   :  { %141 = dma.done.wait [#allocation6], 512  }
  0x19   :  { %142 = vsyncadd [#allocation6], 4294966784  ;;  %v36_v0 = vld [vmem:[#allocation2] sm:$0xff]  ;;  %v37_v2 = vld [vmem:[#allocation2 + $0x8] sm:$0xff]  ;;  %s147_s19 = smov [#allocation7]  }
  0x1a   :  { %v40_v1 = vld [vmem:[#allocation5] sm:$0xff]  ;;  %s66_s0 = sshll.u32 %s147_s19, 4  ;;  %v48_v3 = vmul.f32 2.0, %v36_v0  ;;  %v41_v4 = vld [vmem:[#allocation5 + $0x8] sm:$0xff]  ;;  %v49_v5 = vmul.f32 2.0, %v37_v2  ;;  %v38_v6 = vld [vmem:[#allocation2 + $0x10] sm:$0xff]  ;;  %s67_s0 = int_to_ptr.vmem [resolvable:$true] %s66_s0 }
  0x1b   :  { %vm44_vm0 = vcmp.ge.u32.totalorder %v40_v1, 2147483648  ;;  %v42_v7 = vld [vmem:[#allocation5 + $0x10] sm:$0xff]  ;;  %vm45_vm1 = vcmp.ge.u32.totalorder %v41_v4, 2147483648  ;;  %v50_v8 = vmul.f32 2.0, %v38_v6  ;;  %v39_v9 = vld [vmem:[#allocation2 + $0x18] sm:$0xff]  ;;  %s119_s1 = scalar_lea.vmem %s67_s0, 512  ;;  %p124_p11 = scmp.lt.s32.totalorder %s67_s0, %s67_s0 }
  0x1c   :  { %vm46_vm2 = vcmp.ge.u32.totalorder %v42_v7, 2147483648  ;;  %v43_v10 = vld [vmem:[#allocation5 + $0x18] sm:$0xff]  ;;  %v52_v11 = vsel %vm44_vm0, %v48_v3, 0.0  ;;  %v53_v12 = vsel %vm45_vm1, %v49_v5, 0.0  ;;  %v51_v13 = vmul.f32 2.0, %v39_v9  ;;  %p120_p10 = scmp.ne.s32.totalorder %s67_s0, %s119_s1  ;;  %p125_p12 = scmp.lt.s32.totalorder %s119_s1, %s119_s1 }
  0x1d   :  { %vm47_vm3 = vcmp.ge.u32.totalorder %v43_v10, 2147483648  ;;  %56 = vst [vmem:[#allocation7] sm:$0xff] %v52_v11  ;;  %57 = vst [vmem:[#allocation7 + $0x8] sm:$0xff] %v53_v12  ;;  %v54_v14 = vsel %vm46_vm2, %v50_v8, 0.0 }
  0x1e   :  { %58 = vst [vmem:[#allocation7 + $0x10] sm:$0xff] %v54_v14  ;;  %v55_v15 = vsel %vm47_vm3, %v51_v13, 0.0  ;;  %p126_p13 = por %p125_p12, %p124_p11 }
  0x1f   :  { %59 = vst [vmem:[#allocation7 + $0x18] sm:$0xff] %v55_v15 }
  0x20   :  { %p127_p0 = pnand %p126_p13, %p120_p10 }
  0x22   :  { %130 = shalt.err (!%p127_p0)
}
  0x23   :  { %69 = dma.vmem_to_hbm [thread:$0]  %s67_s0, 512, %s174_s2, [#allocation4]  }
  0x24   :  { %143 = dma.done.wait [#allocation4], 512  }
  0x25   :  { %144 = vsyncadd [#allocation4], 4294966784 }
  0x26   :  { %73 = vsyncpa [#allocation3], 1 }
  0x27   :  { %74 = vsyncpa [#allocation6], 1 }
  0x28   :  { %75 = vsyncpa [#allocation4], 1 }

</bundles_post_ra>
